<compile_context>
chip_gen: v7x
topology: tpu7x:2x2x1
jax: 0.10.0
libtpu: 0.0.40
codegen_flags: <defaults>
</compile_context>

<pallas_src>
import functools

import jax
import jax.numpy as jnp
from jax.experimental import pallas as pl
from jax.experimental.pallas import tpu as pltpu


def _conv3_fused(h, ws_ref, b_ref, first_mask, last_mask):
    """Conv1d(kernel=3, padding=1) on flattened (batch*time) rows, channels-last.

    h:          (M, Cin) bf16, M = Bb*T, row r = b*T + t.
    ws_ref:     (Cin, 3*Cout) bf16 stacked weight;
                cols [0:F)   = tap applied to x[t-1],
                cols [F:2F)  = tap applied to x[t],
                cols [2F:3F) = tap applied to x[t+1].
    b_ref:      (1, Cout) f32 bias.
    first_mask: (M, 1) bool, True where t == 0     (zero the x[t-1] contribution).
    last_mask:  (M, 1) bool, True where t == T-1   (zero the x[t+1] contribution).
    Returns (M, Cout) f32.
    """
    M = h.shape[0]
    F = ws_ref.shape[-1] // 3

    # One wide MXU matmul instead of three narrow ones.
    m = jnp.dot(h, ws_ref[...], preferred_element_type=jnp.float32)   # (M, 3F) f32
    m_prev, m_ctr, m_next = m[:, :F], m[:, F:2 * F], m[:, 2 * F:]

    # out[r] = m_prev[r-1] + m_ctr[r] + m_next[r+1], with zero padding at each
    # utterance boundary.  The rolls wrap across batch rows, but those wrapped
    # rows are exactly the t==0 / t==T-1 rows that the masks zero out.
    prev = pltpu.roll(m_prev, shift=1, axis=0)        # prev[r] = m_prev[r-1]
    nxt = pltpu.roll(m_next, shift=M - 1, axis=0)     # nxt[r]  = m_next[r+1]

    prev = jnp.where(first_mask, 0.0, prev)
    nxt = jnp.where(last_mask, 0.0, nxt)

    return m_ctr + prev + nxt + b_ref[...]


def _layer_norm(h, g_ref, b_ref, eps=1e-5):
    """LayerNorm over channels (PyTorch defaults: biased var, eps=1e-5).

    Single pass (sum and sum-of-squares), rsqrt on the EUP slot.  Variance is
    clamped at 0 to guard the E[x^2]-E[x]^2 cancellation.
    """
    inv_f = 1.0 / h.shape[-1]
    s = jnp.sum(h, axis=-1, keepdims=True)
    s2 = jnp.sum(h * h, axis=-1, keepdims=True)
    mu = s * inv_f
    var = jnp.maximum(s2 * inv_f - mu * mu, 0.0)
    return (h - mu) * jax.lax.rsqrt(var + eps) * g_ref[...] + b_ref[...]


def _variance_predictor_kernel(x_ref,
                               w1_ref, b1_ref, g1_ref, be1_ref,
                               w2_ref, b2_ref, g2_ref, be2_ref,
                               wl_ref, bl_ref,
                               o_ref, *, bb, t):
    m = bb * t
    # x arrives bf16; flatten (Bb, T, H) -> (M, H) to fill the MXU M-dim.
    x = x_ref[...].reshape(m, x_ref.shape[-1])

    # Boundary masks hoisted: built once per step, reused by both convs.
    t_idx = jax.lax.broadcasted_iota(jnp.int32, (bb, t, 1), 1).reshape(m, 1)
    first_mask = t_idx == 0
    last_mask = t_idx == t - 1

    # Conv1d(H -> F, k=3, pad=1) -> LayerNorm(F) -> ReLU   (Dropout = identity)
    h = _conv3_fused(x, w1_ref, b1_ref, first_mask, last_mask)
    h = jnp.maximum(_layer_norm(h, g1_ref, be1_ref), 0.0)

    # Conv1d(F -> F, k=3, pad=1) -> LayerNorm(F) -> ReLU
    h = _conv3_fused(h.astype(jnp.bfloat16), w2_ref, b2_ref, first_mask, last_mask)
    h = jnp.maximum(_layer_norm(h, g2_ref, be2_ref), 0.0)

    # Linear(F -> 1) as VPU multiply + lane reduction (avoids an N=1 MXU matmul).
    # NOTE: if a v6e bundle dump shows XLU as the binding slot, this could move
    # to the MXU via a zero-padded (F,128) weight instead.
    out = jnp.sum(h * wl_ref[...], axis=-1) + bl_ref[0, 0]          # (M,)
    o_ref[...] = out.reshape(1, m).astype(o_ref.dtype)              # lane-dense (1, M)


def _choose_batch_tile(B, T, H, F, *, target_rows=512, budget_bytes=10 << 20):
    """Pick Bb (divisor of B) so that Bb*T fills the MXU M-dim without blowing VMEM."""
    if T % 8 != 0:
        # Flattening (Bb, T, H) -> (Bb*T, H) stays a clean sublane merge only
        # when T is a multiple of the 8-row tile; otherwise keep one row/step.
        return 1
    best = 1
    for bb in range(1, B + 1):
        if B % bb:
            continue
        m = bb * T
        live = (2 * bb * T * H * 2          # x double-buffer (bf16)
                + m * 3 * F * 4             # conv matmul result (f32)
                + 2 * m * F * 4             # live activations (f32)
                + 2 * bb * T * 4)           # output double-buffer (f32)
        if bb > 1 and live > budget_bytes:
            break
        best = bb
        if m >= target_rows:
            break
    return best


def _vmem_estimate_bytes(Bb, T, H, F):
    m = Bb * T
    weights = ((H + F) * 3 * F) * 2 + (8 * F + 2) * 4     # bf16 convs + f32 vectors
    bufs = 2 * Bb * T * H * 2 + 2 * Bb * T * 4            # double-buffered x / out
    live = m * 3 * F * 4 + 2 * m * F * 4                  # f32 intermediates
    return 2 * weights + bufs + live


def variance_predictor(x, params):
    """x: (B, T, H) float32  ->  (B, T) float32."""
    B, T, H = x.shape
    F = params["b1"].shape[-1]

    Bb = _choose_batch_tile(B, T, H, F)
    nb = B // Bb
    M = Bb * T

    # bf16 on the only per-step HBM stream: halves DMA bytes and x's VMEM buffers.
    x_bf16 = x.astype(jnp.bfloat16)

    # Raise the scoped-VMEM limit only when the real footprint needs it.
    est = _vmem_estimate_bytes(Bb, T, H, F)
    vmem_limit = None
    if est > (16 << 20):                      # most conservative default (v5e)
        vmem_limit = int(min(max(2 * est, 32 << 20), 64 << 20))

    kernel = functools.partial(_variance_predictor_kernel, bb=Bb, t=T)

    grid_spec = pltpu.PrefetchScalarGridSpec(
        num_scalar_prefetch=0,
        grid=(nb,),
        in_specs=[
            pl.BlockSpec((Bb, T, H), lambda b: (b, 0, 0)),   # x: Bb batch rows per step
            pl.BlockSpec((H, 3 * F), lambda b: (0, 0)),      # conv1 stacked weight (bf16)
            pl.BlockSpec((1, F), lambda b: (0, 0)),          # conv1 bias
            pl.BlockSpec((1, F), lambda b: (0, 0)),          # ln1 gamma
            pl.BlockSpec((1, F), lambda b: (0, 0)),          # ln1 beta
            pl.BlockSpec((F, 3 * F), lambda b: (0, 0)),      # conv2 stacked weight (bf16)
            pl.BlockSpec((1, F), lambda b: (0, 0)),          # conv2 bias
            pl.BlockSpec((1, F), lambda b: (0, 0)),          # ln2 gamma
            pl.BlockSpec((1, F), lambda b: (0, 0)),          # ln2 beta
            pl.BlockSpec((1, F), lambda b: (0, 0)),          # linear weight row
            pl.BlockSpec((1, 1), lambda b: (0, 0)),          # linear bias
        ],
        # Lane-dense output: last dim is Bb*T (unmasked vst), not a trailing 1.
        out_specs=pl.BlockSpec((None, 1, M), lambda b: (b, 0, 0)),
    )

    out = pl.pallas_call(
        kernel,
        out_shape=jax.ShapeDtypeStruct((nb, 1, M), jnp.float32),
        grid_spec=grid_spec,
        compiler_params=pltpu.CompilerParams(
            dimension_semantics=("parallel",),
            vmem_limit_bytes=vmem_limit),
    )(x_bf16,
      params["w1s"], params["b1"], params["g1"], params["be1"],
      params["w2s"], params["b2"], params["g2"], params["be2"],
      params["wl"], params["bl"])

    # (nb, 1, Bb*T) row-major is exactly (B, T); the reshape is free in XLA.
    return out.reshape(B, T)


def init_params(key, hidden_size, filter_size):
    """Deterministic synthetic parameters, pre-arranged into kernel layout.

    PyTorch Conv1d weight is (Cout, Cin, 3); here each conv is stored as a
    stacked (Cin, 3*Cout) bf16 matrix: [tap k=0 | tap k=1 | tap k=2] along the
    output-channel axis.  PyTorch Linear weight (1, F) is stored as a (1, F)
    f32 row for the VPU reduction.
    """
    ks = jax.random.split(key, 6)
    scale = 0.1
    w1 = scale * jax.random.normal(ks[0], (3, hidden_size, filter_size), jnp.float32)
    w2 = scale * jax.random.normal(ks[2], (3, filter_size, filter_size), jnp.float32)
    w1s = jnp.concatenate([w1[0], w1[1], w1[2]], axis=-1).astype(jnp.bfloat16)
    w2s = jnp.concatenate([w2[0], w2[1], w2[2]], axis=-1).astype(jnp.bfloat16)
    return {
        "w1s": w1s,                                                        # (H, 3F) bf16
        "b1": scale * jax.random.normal(ks[1], (1, filter_size), jnp.float32),
        "g1": jnp.ones((1, filter_size), jnp.float32),
        "be1": jnp.zeros((1, filter_size), jnp.float32),
        "w2s": w2s,                                                        # (F, 3F) bf16
        "b2": scale * jax.random.normal(ks[3], (1, filter_size), jnp.float32),
        "g2": jnp.ones((1, filter_size), jnp.float32),
        "be2": jnp.zeros((1, filter_size), jnp.float32),
        "wl": scale * jax.random.normal(ks[4], (1, filter_size), jnp.float32),
        "bl": scale * jax.random.normal(ks[5], (1, 1), jnp.float32),
    }


def _reference(x, params):
    """Pure-JAX f32 reference (same stored weights; activations kept in f32)."""
    def conv3(h, ws, b):
        cout = ws.shape[-1] // 3
        w = ws.astype(jnp.float32)
        w0, w1, w2 = w[:, :cout], w[:, cout:2 * cout], w[:, 2 * cout:]
        pad = jnp.zeros_like(h[:, :1])
        hm1 = jnp.concatenate([pad, h[:, :-1]], axis=1)    # x[t-1]
        hp1 = jnp.concatenate([h[:, 1:], pad], axis=1)     # x[t+1]
        return hm1 @ w0 + h @ w1 + hp1 @ w2 + b

    def ln(h, g, be, eps=1e-5):
        mu = h.mean(-1, keepdims=True)
        var = ((h - mu) ** 2).mean(-1, keepdims=True)
        return (h - mu) * jax.lax.rsqrt(var + eps) * g + be

    h = conv3(x, params["w1s"], params["b1"])
    h = jnp.maximum(ln(h, params["g1"], params["be1"]), 0.0)
    h = conv3(h, params["w2s"], params["b2"])
    h = jnp.maximum(ln(h, params["g2"], params["be2"]), 0.0)
    return jnp.sum(h * params["wl"], axis=-1) + params["bl"][0, 0]


if __name__ == "__main__":
    B, T, H, F = 2, 8, 32, 32   # batch, seq, hidden_size, variance_predictor_filter_size
    key = jax.random.PRNGKey(0)
    kx, kp = jax.random.split(key)
    x = jax.random.normal(kx, (B, T, H), jnp.float32)
    params = init_params(kp, H, F)

    out = variance_predictor(x, params)
    jax.block_until_ready(out)
    assert out.shape == (B, T), out.shape

    ref = _reference(x, params)
    max_err = float(jnp.max(jnp.abs(out - ref)))
    assert jnp.allclose(out, ref, atol=5e-2, rtol=5e-2), max_err
    print("KERNEL_OK")
</pallas_src>

<mosaic_0001>
module attributes {stable_mosaic.version = 11 : i64} {
  func.func @_variance_predictor_kernel(%arg0: i32, %arg1: memref<2x8x32xbf16, #tpu.memory_space<vmem>>, %arg2: memref<32x96xbf16, #tpu.memory_space<vmem>>, %arg3: memref<1x32xf32, #tpu.memory_space<vmem>>, %arg4: memref<1x32xf32, #tpu.memory_space<vmem>>, %arg5: memref<1x32xf32, #tpu.memory_space<vmem>>, %arg6: memref<32x96xbf16, #tpu.memory_space<vmem>>, %arg7: memref<1x32xf32, #tpu.memory_space<vmem>>, %arg8: memref<1x32xf32, #tpu.memory_space<vmem>>, %arg9: memref<1x32xf32, #tpu.memory_space<vmem>>, %arg10: memref<1x32xf32, #tpu.memory_space<vmem>>, %arg11: memref<1x1xf32, #tpu.memory_space<vmem>>, %arg12: memref<1x1x16xf32, #tpu.memory_space<vmem>>) attributes {dimension_semantics = [#tpu.dimension_semantics<parallel>], iteration_bounds = array<i64: 1>, scalar_prefetch = 0 : i64, scratch_operands = 0 : i64, tpu.core_type = #tpu.core_type<tc>, window_params = [{transform_indices = @transform_0, window_bounds = array<i64: 2, 8, 32>}, {pipeline_mode = #tpu.pipeline_mode<synchronous>, transform_indices = @transform_1, window_bounds = array<i64: 32, 96>}, {pipeline_mode = #tpu.pipeline_mode<synchronous>, transform_indices = @transform_2, window_bounds = array<i64: 1, 32>}, {pipeline_mode = #tpu.pipeline_mode<synchronous>, transform_indices = @transform_3, window_bounds = array<i64: 1, 32>}, {pipeline_mode = #tpu.pipeline_mode<synchronous>, transform_indices = @transform_4, window_bounds = array<i64: 1, 32>}, {pipeline_mode = #tpu.pipeline_mode<synchronous>, transform_indices = @transform_5, window_bounds = array<i64: 32, 96>}, {pipeline_mode = #tpu.pipeline_mode<synchronous>, transform_indices = @transform_6, window_bounds = array<i64: 1, 32>}, {pipeline_mode = #tpu.pipeline_mode<synchronous>, transform_indices = @transform_7, window_bounds = array<i64: 1, 32>}, {pipeline_mode = #tpu.pipeline_mode<synchronous>, transform_indices = @transform_8, window_bounds = array<i64: 1, 32>}, {pipeline_mode = #tpu.pipeline_mode<synchronous>, transform_indices = @transform_9, window_bounds = array<i64: 1, 32>}, {pipeline_mode = #tpu.pipeline_mode<synchronous>, transform_indices = @transform_10, window_bounds = array<i64: 1, 1>}, {transform_indices = @transform_11, window_bounds = array<i64: 1, 1, 16>}]} {
    %c0 = arith.constant 0 : index
    %c0_0 = arith.constant 0 : index
    %c0_1 = arith.constant 0 : index
    %0 = vector.load %arg1[%c0, %c0_0, %c0_1] : memref<2x8x32xbf16, #tpu.memory_space<vmem>>, vector<2x8x32xbf16>
    %1 = vector.shape_cast %0 : vector<2x8x32xbf16> to vector<16x32xbf16>
    %2 = tpu.iota {dimensions = array<i32: 1>} : vector<2x8x1xi32>
    %3 = vector.shape_cast %2 : vector<2x8x1xi32> to vector<16x1xi32>
    %c0_i32 = arith.constant 0 : i32
    %4 = vector.broadcast %c0_i32 : i32 to vector<16x1xi32>
    %5 = arith.cmpi eq, %3, %4 : vector<16x1xi32>
    %c7_i32 = arith.constant 7 : i32
    %6 = vector.broadcast %c7_i32 : i32 to vector<16x1xi32>
    %7 = arith.cmpi eq, %3, %6 : vector<16x1xi32>
    %c0_2 = arith.constant 0 : index
    %c0_3 = arith.constant 0 : index
    %8 = vector.load %arg2[%c0_2, %c0_3] : memref<32x96xbf16, #tpu.memory_space<vmem>>, vector<32x96xbf16>
    %cst = arith.constant dense<0.000000e+00> : vector<16x96xf32>
    %9 = tpu.matmul %1, %8, %cst {dimension_numbers = #tpu.dot_dimension_numbers<[1], [0], [0], [1], [0, 0, 1, 1], [], []>} : vector<16x32xbf16>, vector<32x96xbf16>, vector<16x96xf32> -> vector<16x96xf32>
    %10 = vector.extract_strided_slice %9 {offsets = [0, 0], sizes = [16, 32], strides = [1, 1]} : vector<16x96xf32> to vector<16x32xf32>
    %11 = vector.extract_strided_slice %9 {offsets = [0, 32], sizes = [16, 32], strides = [1, 1]} : vector<16x96xf32> to vector<16x32xf32>
    %12 = vector.extract_strided_slice %9 {offsets = [0, 64], sizes = [16, 32], strides = [1, 1]} : vector<16x96xf32> to vector<16x32xf32>
    %c1_i32 = arith.constant 1 : i32
    %13 = tpu.dynamic_rotate %10 by %c1_i32 dim 0 : vector<16x32xf32>, i32 -> vector<16x32xf32>
    %c15_i32 = arith.constant 15 : i32
    %14 = tpu.dynamic_rotate %12 by %c15_i32 dim 0 : vector<16x32xf32>, i32 -> vector<16x32xf32>
    %cst_4 = arith.constant 0.000000e+00 : f32
    %15 = vector.shape_cast %5 : vector<16x1xi1> to vector<16x1xi1>
    %16 = vector.broadcast %15 : vector<16x1xi1> to vector<16x32xi1>
    %17 = vector.broadcast %cst_4 : f32 to vector<16x32xf32>
    %18 = arith.select %16, %17, %13 : vector<16x32xi1>, vector<16x32xf32>
    %cst_5 = arith.constant 0.000000e+00 : f32
    %19 = vector.shape_cast %7 : vector<16x1xi1> to vector<16x1xi1>
    %20 = vector.broadcast %19 : vector<16x1xi1> to vector<16x32xi1>
    %21 = vector.broadcast %cst_5 : f32 to vector<16x32xf32>
    %22 = arith.select %20, %21, %14 : vector<16x32xi1>, vector<16x32xf32>
    %23 = arith.addf %11, %18 : vector<16x32xf32>
    %24 = arith.addf %23, %22 : vector<16x32xf32>
    %c0_6 = arith.constant 0 : index
    %c0_7 = arith.constant 0 : index
    %25 = vector.load %arg3[%c0_6, %c0_7] : memref<1x32xf32, #tpu.memory_space<vmem>>, vector<1x32xf32>
    %26 = vector.broadcast %25 : vector<1x32xf32> to vector<16x32xf32>
    %27 = arith.addf %24, %26 : vector<16x32xf32>
    %cst_8 = arith.constant dense<0.000000e+00> : vector<16xf32>
    %28 = vector.multi_reduction <add>, %27, %cst_8 [1] : vector<16x32xf32> to vector<16xf32>
    %29 = vector.shape_cast %28 : vector<16xf32> to vector<16x1xf32>
    %30 = arith.mulf %27, %27 : vector<16x32xf32>
    %cst_9 = arith.constant dense<0.000000e+00> : vector<16xf32>
    %31 = vector.multi_reduction <add>, %30, %cst_9 [1] : vector<16x32xf32> to vector<16xf32>
    %32 = vector.shape_cast %31 : vector<16xf32> to vector<16x1xf32>
    %cst_10 = arith.constant 3.125000e-02 : f32
    %33 = vector.broadcast %cst_10 : f32 to vector<16x1xf32>
    %34 = arith.mulf %29, %33 : vector<16x1xf32>
    %cst_11 = arith.constant 3.125000e-02 : f32
    %35 = vector.broadcast %cst_11 : f32 to vector<16x1xf32>
    %36 = arith.mulf %32, %35 : vector<16x1xf32>
    %37 = arith.mulf %34, %34 : vector<16x1xf32>
    %38 = arith.subf %36, %37 : vector<16x1xf32>
    %cst_12 = arith.constant 0.000000e+00 : f32
    %39 = vector.broadcast %cst_12 : f32 to vector<16x1xf32>
    %40 = arith.maximumf %38, %39 : vector<16x1xf32>
    %41 = vector.broadcast %34 : vector<16x1xf32> to vector<16x32xf32>
    %42 = arith.subf %27, %41 : vector<16x32xf32>
    %cst_13 = arith.constant 9.99999974E-6 : f32
    %43 = vector.broadcast %cst_13 : f32 to vector<16x1xf32>
    %44 = arith.addf %40, %43 : vector<16x1xf32>
    %45 = math.rsqrt %44 : vector<16x1xf32>
    %46 = vector.broadcast %45 : vector<16x1xf32> to vector<16x32xf32>
    %47 = arith.mulf %42, %46 : vector<16x32xf32>
    %c0_14 = arith.constant 0 : index
    %c0_15 = arith.constant 0 : index
    %48 = vector.load %arg4[%c0_14, %c0_15] : memref<1x32xf32, #tpu.memory_space<vmem>>, vector<1x32xf32>
    %49 = vector.broadcast %48 : vector<1x32xf32> to vector<16x32xf32>
    %50 = arith.mulf %47, %49 : vector<16x32xf32>
    %c0_16 = arith.constant 0 : index
    %c0_17 = arith.constant 0 : index
    %51 = vector.load %arg5[%c0_16, %c0_17] : memref<1x32xf32, #tpu.memory_space<vmem>>, vector<1x32xf32>
    %52 = vector.broadcast %51 : vector<1x32xf32> to vector<16x32xf32>
    %53 = arith.addf %50, %52 : vector<16x32xf32>
    %cst_18 = arith.constant 0.000000e+00 : f32
    %54 = vector.broadcast %cst_18 : f32 to vector<16x32xf32>
    %55 = arith.maximumf %53, %54 : vector<16x32xf32>
    %56 = arith.truncf %55 : vector<16x32xf32> to vector<16x32xbf16>
    %c0_19 = arith.constant 0 : index
    %c0_20 = arith.constant 0 : index
    %57 = vector.load %arg6[%c0_19, %c0_20] : memref<32x96xbf16, #tpu.memory_space<vmem>>, vector<32x96xbf16>
    %cst_21 = arith.constant dense<0.000000e+00> : vector<16x96xf32>
    %58 = tpu.matmul %56, %57, %cst_21 {dimension_numbers = #tpu.dot_dimension_numbers<[1], [0], [0], [1], [0, 0, 1, 1], [], []>} : vector<16x32xbf16>, vector<32x96xbf16>, vector<16x96xf32> -> vector<16x96xf32>
    %59 = vector.extract_strided_slice %58 {offsets = [0, 0], sizes = [16, 32], strides = [1, 1]} : vector<16x96xf32> to vector<16x32xf32>
    %60 = vector.extract_strided_slice %58 {offsets = [0, 32], sizes = [16, 32], strides = [1, 1]} : vector<16x96xf32> to vector<16x32xf32>
    %61 = vector.extract_strided_slice %58 {offsets = [0, 64], sizes = [16, 32], strides = [1, 1]} : vector<16x96xf32> to vector<16x32xf32>
    %c1_i32_22 = arith.constant 1 : i32
    %62 = tpu.dynamic_rotate %59 by %c1_i32_22 dim 0 : vector<16x32xf32>, i32 -> vector<16x32xf32>
    %c15_i32_23 = arith.constant 15 : i32
    %63 = tpu.dynamic_rotate %61 by %c15_i32_23 dim 0 : vector<16x32xf32>, i32 -> vector<16x32xf32>
    %cst_24 = arith.constant 0.000000e+00 : f32
    %64 = vector.shape_cast %5 : vector<16x1xi1> to vector<16x1xi1>
    %65 = vector.broadcast %64 : vector<16x1xi1> to vector<16x32xi1>
    %66 = vector.broadcast %cst_24 : f32 to vector<16x32xf32>
    %67 = arith.select %65, %66, %62 : vector<16x32xi1>, vector<16x32xf32>
    %cst_25 = arith.constant 0.000000e+00 : f32
    %68 = vector.shape_cast %7 : vector<16x1xi1> to vector<16x1xi1>
    %69 = vector.broadcast %68 : vector<16x1xi1> to vector<16x32xi1>
    %70 = vector.broadcast %cst_25 : f32 to vector<16x32xf32>
    %71 = arith.select %69, %70, %63 : vector<16x32xi1>, vector<16x32xf32>
    %72 = arith.addf %60, %67 : vector<16x32xf32>
    %73 = arith.addf %72, %71 : vector<16x32xf32>
    %c0_26 = arith.constant 0 : index
    %c0_27 = arith.constant 0 : index
    %74 = vector.load %arg7[%c0_26, %c0_27] : memref<1x32xf32, #tpu.memory_space<vmem>>, vector<1x32xf32>
    %75 = vector.broadcast %74 : vector<1x32xf32> to vector<16x32xf32>
    %76 = arith.addf %73, %75 : vector<16x32xf32>
    %cst_28 = arith.constant dense<0.000000e+00> : vector<16xf32>
    %77 = vector.multi_reduction <add>, %76, %cst_28 [1] : vector<16x32xf32> to vector<16xf32>
    %78 = vector.shape_cast %77 : vector<16xf32> to vector<16x1xf32>
    %79 = arith.mulf %76, %76 : vector<16x32xf32>
    %cst_29 = arith.constant dense<0.000000e+00> : vector<16xf32>
    %80 = vector.multi_reduction <add>, %79, %cst_29 [1] : vector<16x32xf32> to vector<16xf32>
    %81 = vector.shape_cast %80 : vector<16xf32> to vector<16x1xf32>
    %cst_30 = arith.constant 3.125000e-02 : f32
    %82 = vector.broadcast %cst_30 : f32 to vector<16x1xf32>
    %83 = arith.mulf %78, %82 : vector<16x1xf32>
    %cst_31 = arith.constant 3.125000e-02 : f32
    %84 = vector.broadcast %cst_31 : f32 to vector<16x1xf32>
    %85 = arith.mulf %81, %84 : vector<16x1xf32>
    %86 = arith.mulf %83, %83 : vector<16x1xf32>
    %87 = arith.subf %85, %86 : vector<16x1xf32>
    %cst_32 = arith.constant 0.000000e+00 : f32
    %88 = vector.broadcast %cst_32 : f32 to vector<16x1xf32>
    %89 = arith.maximumf %87, %88 : vector<16x1xf32>
    %90 = vector.broadcast %83 : vector<16x1xf32> to vector<16x32xf32>
    %91 = arith.subf %76, %90 : vector<16x32xf32>
    %cst_33 = arith.constant 9.99999974E-6 : f32
    %92 = vector.broadcast %cst_33 : f32 to vector<16x1xf32>
    %93 = arith.addf %89, %92 : vector<16x1xf32>
    %94 = math.rsqrt %93 : vector<16x1xf32>
    %95 = vector.broadcast %94 : vector<16x1xf32> to vector<16x32xf32>
    %96 = arith.mulf %91, %95 : vector<16x32xf32>
    %c0_34 = arith.constant 0 : index
    %c0_35 = arith.constant 0 : index
    %97 = vector.load %arg8[%c0_34, %c0_35] : memref<1x32xf32, #tpu.memory_space<vmem>>, vector<1x32xf32>
    %98 = vector.broadcast %97 : vector<1x32xf32> to vector<16x32xf32>
    %99 = arith.mulf %96, %98 : vector<16x32xf32>
    %c0_36 = arith.constant 0 : index
    %c0_37 = arith.constant 0 : index
    %100 = vector.load %arg9[%c0_36, %c0_37] : memref<1x32xf32, #tpu.memory_space<vmem>>, vector<1x32xf32>
    %101 = vector.broadcast %100 : vector<1x32xf32> to vector<16x32xf32>
    %102 = arith.addf %99, %101 : vector<16x32xf32>
    %cst_38 = arith.constant 0.000000e+00 : f32
    %103 = vector.broadcast %cst_38 : f32 to vector<16x32xf32>
    %104 = arith.maximumf %102, %103 : vector<16x32xf32>
    %c0_39 = arith.constant 0 : index
    %c0_40 = arith.constant 0 : index
    %105 = vector.load %arg10[%c0_39, %c0_40] : memref<1x32xf32, #tpu.memory_space<vmem>>, vector<1x32xf32>
    %106 = vector.broadcast %105 : vector<1x32xf32> to vector<16x32xf32>
    %107 = arith.mulf %104, %106 : vector<16x32xf32>
    %cst_41 = arith.constant dense<0.000000e+00> : vector<16xf32>
    %108 = vector.multi_reduction <add>, %107, %cst_41 [1] : vector<16x32xf32> to vector<16xf32>
    %c0_42 = arith.constant 0 : index
    %c0_43 = arith.constant 0 : index
    %109 = vector.load %arg11[%c0_42, %c0_43] : memref<1x1xf32, #tpu.memory_space<vmem>>, vector<1x1xf32>
    %110 = vector.extract %109[0, 0] : f32 from vector<1x1xf32>
    %111 = vector.broadcast %110 : f32 to vector<16xf32>
    %112 = arith.addf %108, %111 : vector<16xf32>
    %113 = vector.shape_cast %112 : vector<16xf32> to vector<1x16xf32>
    %c0_44 = arith.constant 0 : index
    %c0_45 = arith.constant 0 : index
    %c0_46 = arith.constant 0 : index
    %114 = vector.load %arg12[%c0_44, %c0_45, %c0_46] : memref<1x1x16xf32, #tpu.memory_space<vmem>>, vector<1x1x16xf32>
    %115 = vector.shape_cast %114 : vector<1x1x16xf32> to vector<1x16xf32>
    %116 = vector.shape_cast %113 : vector<1x16xf32> to vector<1x1x16xf32>
    tpu.vector_store %arg12[%c0_44, %c0_45, %c0_46], %116 {strides = array<i32>} : memref<1x1x16xf32, #tpu.memory_space<vmem>>, vector<1x1x16xf32>,
    return
  }
  func.func @transform_0(%arg0: i32) -> (i32, i32, i32) {
    %c0_i32 = arith.constant 0 : i32
    %c0_i32_0 = arith.constant 0 : i32
    %c0_i32_1 = arith.constant 0 : i32
    return %arg0, %c0_i32, %c0_i32_0 : i32, i32, i32
  }
  func.func @transform_1(%arg0: i32) -> (i32, i32) {
    %c0_i32 = arith.constant 0 : i32
    %c0_i32_0 = arith.constant 0 : i32
    %c0_i32_1 = arith.constant 0 : i32
    return %c0_i32, %c0_i32_0 : i32, i32
  }
  func.func @transform_2(%arg0: i32) -> (i32, i32) {
    %c0_i32 = arith.constant 0 : i32
    %c0_i32_0 = arith.constant 0 : i32
    %c0_i32_1 = arith.constant 0 : i32
    return %c0_i32, %c0_i32_0 : i32, i32
  }
  func.func @transform_3(%arg0: i32) -> (i32, i32) {
    %c0_i32 = arith.constant 0 : i32
    %c0_i32_0 = arith.constant 0 : i32
    %c0_i32_1 = arith.constant 0 : i32
    return %c0_i32, %c0_i32_0 : i32, i32
  }
  func.func @transform_4(%arg0: i32) -> (i32, i32) {
    %c0_i32 = arith.constant 0 : i32
    %c0_i32_0 = arith.constant 0 : i32
    %c0_i32_1 = arith.constant 0 : i32
    return %c0_i32, %c0_i32_0 : i32, i32
  }
  func.func @transform_5(%arg0: i32) -> (i32, i32) {
    %c0_i32 = arith.constant 0 : i32
    %c0_i32_0 = arith.constant 0 : i32
    %c0_i32_1 = arith.constant 0 : i32
    return %c0_i32, %c0_i32_0 : i32, i32
  }
  func.func @transform_6(%arg0: i32) -> (i32, i32) {
    %c0_i32 = arith.constant 0 : i32
    %c0_i32_0 = arith.constant 0 : i32
    %c0_i32_1 = arith.constant 0 : i32
    return %c0_i32, %c0_i32_0 : i32, i32
  }
  func.func @transform_7(%arg0: i32) -> (i32, i32) {
    %c0_i32 = arith.constant 0 : i32
    %c0_i32_0 = arith.constant 0 : i32
    %c0_i32_1 = arith.constant 0 : i32
    return %c0_i32, %c0_i32_0 : i32, i32
  }
  func.func @transform_8(%arg0: i32) -> (i32, i32) {
    %c0_i32 = arith.constant 0 : i32
    %c0_i32_0 = arith.constant 0 : i32
    %c0_i32_1 = arith.constant 0 : i32
    return %c0_i32, %c0_i32_0 : i32, i32
  }
  func.func @transform_9(%arg0: i32) -> (i32, i32) {
    %c0_i32 = arith.constant 0 : i32
    %c0_i32_0 = arith.constant 0 : i32
    %c0_i32_1 = arith.constant 0 : i32
    return %c0_i32, %c0_i32_0 : i32, i32
  }
  func.func @transform_10(%arg0: i32) -> (i32, i32) {
    %c0_i32 = arith.constant 0 : i32
    %c0_i32_0 = arith.constant 0 : i32
    %c0_i32_1 = arith.constant 0 : i32
    return %c0_i32, %c0_i32_0 : i32, i32
  }
  func.func @transform_11(%arg0: i32) -> (i32, i32, i32) {
    %c0_i32 = arith.constant 0 : i32
    %c0_i32_0 = arith.constant 0 : i32
    %c0_i32_1 = arith.constant 0 : i32
    return %arg0, %c0_i32, %c0_i32_0 : i32, i32, i32
  }
}

</mosaic_0001>

<bundles_post_ra>
// kernel: tpu_custom_call.1
= control target key start
LH: loop header
LB: loop body
LE: loop exit
PB: predicated region body
PF: predicated region fallthrough
CT: control target
= control target key end

     0   :  { %s883_s0 = inlined_call_operand.hbm [shape: bf16[2,8,32], index: 0, kind: input, shape index: {}]   ;;  %s884_s1 = inlined_call_operand.hbm [shape: bf16[32,96], index: 1, kind: input, shape index: {}]   ;;  %s885_s2 = inlined_call_operand.vmem [shape: f32[1,32], index: 2, kind: input, shape index: {}]   ;;  %s886_s3 = inlined_call_operand.vmem [shape: f32[1,32], index: 3, kind: input, shape index: {}]   ;;  %s887_s4 = inlined_call_operand.vmem [shape: f32[1,32], index: 4, kind: input, shape index: {}]   ;;  %s888_s5 = inlined_call_operand.vmem [shape: bf16[32,96], index: 5, kind: input, shape index: {}]   ;;  %s889_s6 = inlined_call_operand.vmem [shape: f32[1,32], index: 6, kind: input, shape index: {}]   ;;  %s890_s7 = inlined_call_operand.vmem [shape: f32[1,32], index: 7, kind: input, shape index: {}]   ;;  %s891_s8 = inlined_call_operand.vmem [shape: f32[1,32], index: 8, kind: input, shape index: {}]   ;;  %s892_s9 = inlined_call_operand.vmem [shape: f32[1,32], index: 9, kind: input, shape index: {}]   ;;  %s893_s10 = inlined_call_operand.<no memory space> [shape: f32[1,1], index: 10, kind: input, shape index: {}]   ;;  %s894_s11 = inlined_call_operand.hbm [shape: f32[1,1,16], index: 11, kind: output, shape index: {}]  }
   0x1   :  { %v16_v0 = vstv %s893_s10 }
   0x2   :  { %17 = vst [vmem:[#allocation2] sm:$0x1] %v16_v0 }
   0x3   :  { %18 = vsyncpa [#allocation4], 0 }
   0x4   :  { %19 = vsyncpa [#allocation7], 0 }
   0x5   :  { %20 = vsyncpa [#allocation5], 0  ;;  %s654_s19 = smov [#allocation3]   ;;  %s582_s23 = scalar_lea.hbm %s883_s0, 128 }
   0x6   :  { %s26_s20 = sshll.u32 %s654_s19, 4  ;;  %p583_p0 = scmp.ne.s32.totalorder %s883_s0, %s582_s23  ;;  %s27_s20 = int_to_ptr.vmem [resolvable:$true] %s26_s20 }
   0x7   :  { %p586_p1 = scmp.lt.u32.totalorder %s582_s23, %s883_s0 }
   0x9   :  { %p588_p2 = pnand %p586_p1, %p583_p0 }
   0xb   :  { %591 = shalt.err (!%p588_p2)
}
   0xc   :  { %s592_s10 = scalar_lea.vmem %s27_s20, 128  ;;  %p597_p4 = scmp.lt.s32.totalorder %s27_s20, %s27_s20 }
   0xd   :  { %p593_p3 = scmp.ne.s32.totalorder %s27_s20, %s592_s10  ;;  %p598_p5 = scmp.lt.s32.totalorder %s592_s10, %s592_s10 }
   0xf   :  { %p599_p6 = por %p598_p5, %p597_p4 }
  0x11   :  { %p600_p7 = pnand %p599_p6, %p593_p3 }
  0x13   :  { %603 = shalt.err (!%p600_p7)
}
  0x14   :  { %s655_s28 = smov 64   ;;  %s656_s29 = smov 4  }
  0x15   :  { %32 = dma.hbm_to_vmem [thread:$0]  %s883_s0, 128, %s27_s20, [#allocation4], %s655_s28, %s655_s28, %s656_s29  }
  0x16   :  { %s657_s13 = smov [#allocation6]   ;;  %s604_s17 = scalar_lea.hbm %s884_s1, 256 }
  0x17   :  { %s38_s14 = sshll.u32 %s657_s13, 4  ;;  %p605_p8 = scmp.ne.s32.totalorder %s884_s1, %s604_s17  ;;  %s39_s14 = int_to_ptr.vmem [resolvable:$true] %s38_s14 }
  0x18   :  { %p608_p9 = scmp.lt.u32.totalorder %s604_s17, %s884_s1 }
  0x1a   :  { %p610_p10 = pnand %p608_p9, %p605_p8 }
  0x1c   :  { %613 = shalt.err (!%p610_p10)
}
  0x1d   :  { %s614_s23 = scalar_lea.vmem %s39_s14, 256  ;;  %p619_p12 = scmp.lt.s32.totalorder %s39_s14, %s39_s14 }
  0x1e   :  { %p615_p11 = scmp.ne.s32.totalorder %s39_s14, %s614_s23  ;;  %p620_p13 = scmp.lt.s32.totalorder %s614_s23, %s614_s23 }
  0x20   :  { %p621_p0 = por %p620_p13, %p619_p12 }
  0x22   :  { %p622_p1 = pnand %p621_p0, %p615_p11 }
  0x24   :  { %625 = shalt.err (!%p622_p1)
}
  0x25   :  { %44 = dma.hbm_to_vmem [thread:$0]  %s884_s1, 256, %s39_s14, [#allocation7], %s655_s28, %s655_s28, %s656_s29  }
  0x26   :  { %648 = dma.done.wait [#allocation4], 128  }
  0x27   :  { %649 = vsyncadd [#allocation4], 4294967168 }
  0x28   :  { %650 = dma.done.wait [#allocation7], 256  }
  0x29   :  { %651 = vsyncadd [#allocation7], 4294967040  ;;  %v658_v1 = vmov 0.0   ;;  %vm659_vm0 = vmmov 0   ;;  %v569_v2 = vld [vmem:[#allocation6] sm:$0xff]   ;;  %v570_v3 = vld [vmem:[#allocation6 + $0x8] sm:$0xff]   ;;  %v72_v5 = vlaneseq }
  0x2a   :  { %542 = vmatprep.subr.bf16.mxu0 %v658_v1  ;;  %546 = vmatprep.mubr.msk.bf16.mxu0 %vm659_vm0, %v658_v1  ;;  %v571_v4 = vld [vmem:[#allocation3] sm:$0xff]   ;;  %vm97_vm1 = vcmask 261120   ;;  %s660_s1 = smov 32   ;;  %v526_v25 = vld [vmem:[%s885_s2] ss:$0 sm:$0xff]  ;;  %s661_s26 = smov 96  }
  0x2b   :  { %550 = vmatprep.subr.bf16.mxu1 %v658_v1  ;;  %554 = vmatprep.mubr.msk.bf16.mxu1 %vm659_vm0, %v658_v1  ;;  %v761_v6 = vshrl.u32 %v72_v5, 7  ;;  %v528_v47 = vld [vmem:[%s887_s4] ss:$0 sm:$0xff]  ;;  %v573_v50 = vld [vmem:[%s888_s5 + $0x8] sm:$0xff]   ;;  %vm501_vm6 = vcmask 130112   ;;  %vm504_vm7 = vcmask 122880  }
  0x2c   :  { %543 = vmatpush3.bf16.msra.mxu0 %v569_v2  ;;  %v527_v48 = vld [vmem:[%s886_s3] ss:$0 sm:$0xff] }
  0x2d   :  { %544 = vmatprep.subr.bf16.mxu0 %v658_v1  ;;  %vm144_vm2 = vcmp.lt.s32.totalorder %v761_v6, 1  ;;  %vm74_vm3 = vcmp.eq.s32.totalorder %v761_v6, 0  ;;  %vm157_vm4 = vcmp.lt.s32.totalorder %v761_v6, 7  ;;  %vm75_vm5 = vcmp.eq.s32.totalorder %v761_v6, 7  ;;  %v572_v49 = vld [vmem:[%s888_s5] sm:$0xff]  }
  0x2e   :  { %551 = vmatpush3.bf16.msra.mxu1 %v572_v49 }
  0x2f   :  { %552 = vmatprep.subr.bf16.mxu1 %v658_v1 }
  0x30   :  { %545 = vmatpush3.bf16.msra.mxu0 %v570_v3 }
  0x32   :  { %553 = vmatpush3.bf16.msra.mxu1 %v573_v50 }
  0x33   :  { %547 = vmatmul.mubr.msk.bf16.vlgmr.msra.gmra.mrb[0].mxu0 %vm97_vm1, %v571_v4 }
 0x106   :  { %v135_v7 = vpop.f32.mrb[0].mxu0 }
 0x107   :  { %149 = vrot.lane.b32.xlu0 %v135_v7, %s655_s28  ;;  %v548_v8 = vpop.f32.mrb[1].mxu0  ;;  %v142_v10 = vrot.slane %v135_v7, 7 }
 0x108   :  { %v138_v9 = vpop.f32.mrb[2].mxu0 }
 0x109   :  { %v143_v11 = vrot.slane %v138_v9, 7  ;;  %v549_v12 = vpop.f32.mrb[3].mxu0 }
 0x10b   :  { %151 = vrot.lane.b32.xlu0 %v138_v9, %s655_s28  ;;  %v146_v13 = vsel %vm144_vm2, %v143_v11, %v142_v10  ;;  %v145_v14 = vsel %vm144_vm2, %v142_v10, %v143_v11 }
 0x10c   :  { %v162_v15 = vsel %vm74_vm3, 0.0, %v146_v13  ;;  %v163_v16 = vsel %vm74_vm3, 0.0, %v145_v14 }
 0x10d   :  { %170 = vrot.lane.b32.xlu1 %v162_v15, %s660_s1 }
 0x111   :  { %172 = vrot.lane.b32.xlu1 %v163_v16, %s660_s1 }
 0x179   :  { %v150_v17 = vpop.permute.xlu0 %149 }
 0x17a   :  { %v155_v19 = vrot.slane %v150_v17, 1 }
 0x17d   :  { %v152_v18 = vpop.permute.xlu0 %151 }
 0x17e   :  { %v156_v20 = vrot.slane %v152_v18, 1 }
 0x17f   :  { %v171_v26 = vpop.permute.xlu1 %170 }
 0x180   :  { %v158_v21 = vsel %vm157_vm4, %v155_v19, %v156_v20  ;;  %v159_v22 = vsel %vm157_vm4, %v156_v20, %v155_v19  ;;  %v176_v30 = vadd.f32 %v171_v26, %v135_v7 }
 0x181   :  { %v166_v23 = vsel %vm75_vm5, 0.0, %v158_v21  ;;  %v167_v24 = vsel %vm75_vm5, 0.0, %v159_v22 }
 0x182   :  { %180 = vrot.lane.b32.xlu0 %v166_v23, %s660_s1  ;;  %182 = vrot.lane.b32.xlu1 %v167_v24, %s660_s1 }
 0x183   :  { %v173_v27 = vpop.permute.xlu1 %172 }
 0x184   :  { %v177_v31 = vadd.f32 %v173_v27, %v138_v9 }
 0x186   :  { %194 = vrot.lane.b32.xlu0 %v526_v25, %s660_s1 }
 0x1f4   :  { %v181_v28 = vpop.permute.xlu0 %180  ;;  %v183_v29 = vpop.permute.xlu1 %182 }
 0x1f5   :  { %v186_v32 = vadd.f32 %v181_v28, %v176_v30  ;;  %v187_v33 = vadd.f32 %v183_v29, %v177_v31 }
 0x1f8   :  { %v195_v34 = vpop.permute.xlu0 %194 }
 0x1f9   :  { %v197_v35 = vadd.f32 %v195_v34, %v186_v32  ;;  %v198_v36 = vadd.f32 %v195_v34, %v187_v33 }
 0x1fb   :  { %201 = vrot.lane.b32.xlu1 %v197_v35, %s661_s26  ;;  %203 = vrot.lane.b32.xlu0 %v198_v36, %s661_s26  ;;  %v213_v37 = vmul.f32 %v197_v35, %v197_v35  ;;  %v214_v38 = vmul.f32 %v198_v36, %v198_v36 }
 0x1ff   :  { %217 = vrot.lane.b32.xlu1 %v213_v37, %s661_s26  ;;  %219 = vrot.lane.b32.xlu0 %v214_v38, %s661_s26 }
 0x26d   :  { %v204_v39 = vpop.permute.xlu0 %203  ;;  %v202_v40 = vpop.permute.xlu1 %201 }
 0x26e   :  { %v210_v41 = vsel %vm97_vm1, %v204_v39, 0.0  ;;  %v207_v42 = vsel %vm97_vm1, %v202_v40, 0.0  ;;  %v532_v39 = vld [vmem:[%s889_s6] ss:$0 sm:$0xff] }
 0x26f   :  { %211 = vadd.xlane.f32.xlu0 %v210_v41  ;;  %208 = vadd.xlane.f32.xlu1 %v207_v42 }
 0x271   :  { %v220_v43 = vpop.permute.xlu0 %219  ;;  %v218_v44 = vpop.permute.xlu1 %217 }
 0x272   :  { %v226_v45 = vsel %vm97_vm1, %v220_v43, 0.0  ;;  %v223_v46 = vsel %vm97_vm1, %v218_v44, 0.0 }
 0x273   :  { %227 = vadd.xlane.f32.xlu1 %v226_v45  ;;  %224 = vadd.xlane.f32.xlu0 %v223_v46 }
 0x284   :  { %264 = vrot.lane.b32.xlu1 %v528_v47, %s660_s1 }
 0x289   :  { %253 = vrot.lane.b32.xlu0 %v527_v48, %s660_s1 }
 0x2fc   :  { %v212_v51 = vpop.xlane.xlu0 %211  ;;  %v209_v52 = vpop.xlane.xlu1 %208 }
 0x2fd   :  { %v230_v53 = vmul.f32 0.03125, %v212_v51  ;;  %v229_v54 = vmul.f32 0.03125, %v209_v52 }
 0x2ff   :  { %v234_v57 = vmul.f32 %v230_v53, %v230_v53  ;;  %v233_v58 = vmul.f32 %v229_v54, %v229_v54  ;;  %v239_v1 = vsub.f32 %v197_v35, %v229_v54  ;;  %v240_v7 = vsub.f32 %v198_v36, %v230_v53 }
 0x300   :  { %v225_v55 = vpop.xlane.xlu0 %224  ;;  %v228_v56 = vpop.xlane.xlu1 %227 }
 0x301   :  { %v231_v59 = vmul.f32 0.03125, %v225_v55  ;;  %v232_v60 = vmul.f32 0.03125, %v228_v56 }
 0x303   :  { %v235_v61 = vsub.f32 %v231_v59, %v233_v58  ;;  %v236_v62 = vsub.f32 %v232_v60, %v234_v57 }
 0x304   :  { %v254_v8 = vpop.permute.xlu0 %253  ;;  %v265_v12 = vpop.permute.xlu1 %264 }
 0x305   :  { %v237_v63 = vmax.f32 %v235_v61, 0.0  ;;  %v238_v0 = vmax.f32 %v236_v62, 0.0  ;;  %v534_v61 = vld [vmem:[%s891_s8] ss:$0 sm:$0xff]  ;;  %s662_s8 = smov [#allocation8]  }
 0x306   :  { %v535_v62 = vld [vmem:[%s892_s9] ss:$0 sm:$0xff]  ;;  %s512_s9 = sshll.u32 %s662_s8, 4  ;;  %s513_s9 = int_to_ptr.vmem [resolvable:$true] %s512_s9 }
 0x307   :  { %v241_v2 = vadd.f32 1e-05, %v237_v63  ;;  %v242_v3 = vadd.f32 1e-05, %v238_v0  ;;  %v533_v63 = vld [vmem:[%s890_s7] ss:$0 sm:$0xff]  ;;  %p631_p3 = scmp.lt.s32.totalorder %s513_s9, %s513_s9 }
 0x308   :  { %s626_s18 = scalar_lea.vmem %s513_s9, 16  ;;  %s630_s19 = scalar_lea.vmem %s513_s9, 32 }
 0x309   :  { %574 = vrsqrt.f32 %v241_v2  ;;  %p627_p2 = scmp.ne.s32.totalorder %s513_s9, %s626_s18  ;;  %p632_p4 = scmp.lt.s32.totalorder %s630_s19, %s626_s18 }
 0x30a   :  { %576 = vrsqrt.f32 %v242_v3 }
 0x30b   :  { %p633_p5 = por %p632_p4, %p631_p3 }
 0x30d   :  { %p634_p6 = pnand %p633_p5, %p627_p2 }
 0x313   :  { %v575_v4 = vpop.eup %574 }
 0x314   :  { %v577_v9 = vpop.eup %576  ;;  %v245_v10 = vmul.f32 %v575_v4, %v239_v1 }
 0x315   :  { %v246_v11 = vmul.f32 %v577_v9, %v240_v7 }
 0x316   :  { %v256_v13 = vmul.f32 %v254_v8, %v245_v10 }
 0x317   :  { %v257_v14 = vmul.f32 %v254_v8, %v246_v11 }
 0x318   :  { %v267_v15 = vadd.f32 %v265_v12, %v256_v13 }
 0x319   :  { %v268_v16 = vadd.f32 %v265_v12, %v257_v14 }
 0x31a   :  { %v269_v17 = vmax.f32 %v267_v15, 0.0 }
 0x31b   :  { %v270_v18 = vmax.f32 %v268_v16, 0.0 }
 0x31d   :  { %v271_v19 = vpack.c.bf16 %v270_v18, %v269_v17 }
 0x31f   :  { %277 = vrot.lane.b32.xlu1 %v271_v19, %s661_s26 }
 0x391   :  { %v278_v20 = vpop.permute.xlu1 %277 }
 0x392   :  { %555 = vmatmul.mubr.msk.bf16.vlgmr.msra.gmra.mrb[0].mxu1 %vm97_vm1, %v278_v20 }
 0x465   :  { %v328_v21 = vpop.f32.mrb[0].mxu1 }
 0x466   :  { %341 = vrot.lane.b32.xlu0 %v328_v21, %s655_s28  ;;  %v556_v22 = vpop.f32.mrb[1].mxu1  ;;  %v335_v24 = vrot.slane %v328_v21, 7 }
 0x467   :  { %v331_v23 = vpop.f32.mrb[2].mxu1 }
 0x468   :  { %v336_v25 = vrot.slane %v331_v23, 7  ;;  %343 = vrot.lane.b32.xlu1 %v331_v23, %s655_s28  ;;  %v557_v26 = vpop.f32.mrb[3].mxu1 }
 0x46a   :  { %v338_v27 = vsel %vm144_vm2, %v336_v25, %v335_v24  ;;  %v337_v28 = vsel %vm144_vm2, %v335_v24, %v336_v25 }
 0x46b   :  { %v351_v29 = vsel %vm74_vm3, 0.0, %v338_v27  ;;  %v352_v30 = vsel %vm74_vm3, 0.0, %v337_v28 }
 0x46c   :  { %357 = vrot.lane.b32.xlu0 %v351_v29, %s660_s1  ;;  %359 = vrot.lane.b32.xlu1 %v352_v30, %s660_s1 }
 0x4d8   :  { %v342_v31 = vpop.permute.xlu0 %341 }
 0x4d9   :  { %v347_v33 = vrot.slane %v342_v31, 1 }
 0x4da   :  { %v344_v32 = vpop.permute.xlu1 %343 }
 0x4db   :  { %v348_v34 = vrot.slane %v344_v32, 1 }
 0x4dd   :  { %v349_v35 = vsel %vm157_vm4, %v347_v33, %v348_v34  ;;  %v350_v36 = vsel %vm157_vm4, %v348_v34, %v347_v33 }
 0x4de   :  { %v353_v37 = vsel %vm75_vm5, 0.0, %v349_v35  ;;  %v354_v38 = vsel %vm75_vm5, 0.0, %v350_v36  ;;  %v358_v40 = vpop.permute.xlu0 %357  ;;  %v360_v41 = vpop.permute.xlu1 %359 }
 0x4df   :  { %367 = vrot.lane.b32.xlu0 %v353_v37, %s660_s1  ;;  %369 = vrot.lane.b32.xlu1 %v354_v38, %s660_s1  ;;  %v363_v44 = vadd.f32 %v358_v40, %v328_v21  ;;  %v364_v45 = vadd.f32 %v360_v41, %v331_v23  ;;  %v483_v23 = vld [vmem:[#allocation2] sm:$0x1]  ;;  %v491_v40 = vand.u32 127, %v72_v5 }
 0x4e0   :  { %558 = vpush %v483_v23 }
 0x4e1   :  { %v496_v41 = vadd.s32 4294967288, %v491_v40 }
 0x4e3   :  { %381 = vrot.lane.b32.xlu0 %v532_v39, %s660_s1 }
 0x511   :  { %s559_s7 = spop %558 }
 0x551   :  { %v368_v42 = vpop.permute.xlu0 %367  ;;  %v370_v43 = vpop.permute.xlu1 %369 }
 0x552   :  { %v373_v46 = vadd.f32 %v368_v42, %v363_v44  ;;  %v374_v47 = vadd.f32 %v370_v43, %v364_v45  ;;  %v485_v42 = vstv %s559_s7  ;;  %v494_v43 = vsub.s32 %v491_v40, %v761_v6 }
 0x553   :  { %v499_v44 = vsub.s32 %v496_v41, %v761_v6 }
 0x555   :  { %v382_v48 = vpop.permute.xlu0 %381 }
 0x556   :  { %v384_v49 = vadd.f32 %v382_v48, %v373_v46  ;;  %v385_v50 = vadd.f32 %v382_v48, %v374_v47 }
 0x558   :  { %388 = vrot.lane.b32.xlu1 %v384_v49, %s661_s26  ;;  %390 = vrot.lane.b32.xlu0 %v385_v50, %s661_s26  ;;  %v400_v51 = vmul.f32 %v384_v49, %v384_v49  ;;  %v401_v52 = vmul.f32 %v385_v50, %v385_v50 }
 0x55c   :  { %404 = vrot.lane.b32.xlu1 %v400_v51, %s661_s26  ;;  %406 = vrot.lane.b32.xlu0 %v401_v52, %s661_s26 }
 0x5ca   :  { %v391_v53 = vpop.permute.xlu0 %390  ;;  %v389_v54 = vpop.permute.xlu1 %388 }
 0x5cb   :  { %v397_v55 = vsel %vm97_vm1, %v391_v53, 0.0  ;;  %v394_v56 = vsel %vm97_vm1, %v389_v54, 0.0 }
 0x5cc   :  { %398 = vadd.xlane.f32.xlu0 %v397_v55  ;;  %395 = vadd.xlane.f32.xlu1 %v394_v56 }
 0x5ce   :  { %v407_v57 = vpop.permute.xlu0 %406  ;;  %v405_v58 = vpop.permute.xlu1 %404 }
 0x5cf   :  { %v413_v59 = vsel %vm97_vm1, %v407_v57, 0.0  ;;  %v410_v60 = vsel %vm97_vm1, %v405_v58, 0.0 }
 0x5d0   :  { %414 = vadd.xlane.f32.xlu1 %v413_v59  ;;  %411 = vadd.xlane.f32.xlu0 %v410_v60 }
 0x5e1   :  { %451 = vrot.lane.b32.xlu1 %v534_v61, %s660_s1 }
 0x5e5   :  { %464 = vrot.lane.b32.xlu1 %v535_v62, %s660_s1 }
 0x5e6   :  { %440 = vrot.lane.b32.xlu0 %v533_v63, %s660_s1 }
 0x659   :  { %v399_v0 = vpop.xlane.xlu0 %398  ;;  %v396_v2 = vpop.xlane.xlu1 %395 }
 0x65a   :  { %v417_v3 = vmul.f32 0.03125, %v399_v0  ;;  %v416_v1 = vmul.f32 0.03125, %v396_v2 }
 0x65c   :  { %v421_v8 = vmul.f32 %v417_v3, %v417_v3  ;;  %v420_v9 = vmul.f32 %v416_v1, %v416_v1  ;;  %v426_v18 = vsub.f32 %v384_v49, %v416_v1  ;;  %v427_v20 = vsub.f32 %v385_v50, %v417_v3 }
 0x65d   :  { %v412_v4 = vpop.xlane.xlu0 %411  ;;  %v415_v7 = vpop.xlane.xlu1 %414 }
 0x65e   :  { %v418_v10 = vmul.f32 0.03125, %v412_v4  ;;  %v419_v11 = vmul.f32 0.03125, %v415_v7 }
 0x660   :  { %v422_v12 = vsub.f32 %v418_v10, %v420_v9  ;;  %v423_v13 = vsub.f32 %v419_v11, %v421_v8 }
 0x661   :  { %v441_v21 = vpop.permute.xlu0 %440  ;;  %v452_v22 = vpop.permute.xlu1 %451 }
 0x662   :  { %v424_v14 = vmax.f32 %v422_v12, 0.0  ;;  %v425_v15 = vmax.f32 %v423_v13, 0.0 }
 0x664   :  { %v428_v16 = vadd.f32 1e-05, %v424_v14  ;;  %v429_v17 = vadd.f32 1e-05, %v425_v15 }
 0x665   :  { %v465_v31 = vpop.permute.xlu1 %464 }
 0x666   :  { %578 = vrsqrt.f32 %v428_v16 }
 0x667   :  { %580 = vrsqrt.f32 %v429_v17 }
 0x670   :  { %v579_v19 = vpop.eup %578 }
 0x671   :  { %v581_v24 = vpop.eup %580  ;;  %v432_v25 = vmul.f32 %v579_v19, %v426_v18 }
 0x672   :  { %v433_v26 = vmul.f32 %v581_v24, %v427_v20 }
 0x673   :  { %v443_v27 = vmul.f32 %v441_v21, %v432_v25 }
 0x674   :  { %v444_v28 = vmul.f32 %v441_v21, %v433_v26 }
 0x675   :  { %v454_v29 = vadd.f32 %v452_v22, %v443_v27 }
 0x676   :  { %v455_v30 = vadd.f32 %v452_v22, %v444_v28 }
 0x677   :  { %v456_v32 = vmax.f32 %v454_v29, 0.0 }
 0x678   :  { %v457_v33 = vmax.f32 %v455_v30, 0.0 }
 0x679   :  { %v467_v34 = vmul.f32 %v465_v31, %v456_v32 }
 0x67a   :  { %v468_v35 = vmul.f32 %v465_v31, %v457_v33 }
 0x67b   :  { %471 = vrot.lane.b32.xlu0 %v467_v34, %s661_s26 }
 0x67c   :  { %473 = vrot.lane.b32.xlu1 %v468_v35, %s661_s26 }
 0x6ed   :  { %v472_v36 = vpop.permute.xlu0 %471 }
 0x6ee   :  { %v474_v37 = vpop.permute.xlu1 %473  ;;  %v477_v38 = vsel %vm97_vm1, %v472_v36, 0.0 }
 0x6ef   :  { %v480_v39 = vsel %vm97_vm1, %v474_v37, 0.0  ;;  %478 = vadd.xlane.f32.xlu0 %v477_v38 }
 0x6f0   :  { %481 = vadd.xlane.f32.xlu1 %v480_v39 }
 0x77c   :  { %v479_v45 = vpop.xlane.xlu0 %478 }
 0x77d   :  { %v482_v46 = vpop.xlane.xlu1 %481  ;;  %v486_v47 = vadd.f32 %v485_v42, %v479_v45 }
 0x77e   :  { %v487_v48 = vadd.f32 %v485_v42, %v482_v46 }
 0x77f   :  { %v495_v49 = vrot.slane %v486_v47, %v494_v43 }
 0x780   :  { %v500_v50 = vrot.slane %v487_v48, %v499_v44 }
 0x782   :  { %v502_v51 = vsel %vm501_vm6, %v500_v50, %v495_v49 }
 0x783   :  { %505 = vst.msk [vmem:[#allocation8] sm:$0x1] %vm504_vm7, %v502_v51 }
 0x784   :  { %637 = shalt.err (!%p634_p6)
}
 0x785   :  { %s638_s23 = scalar_lea.hbm %s894_s11, 16 }
 0x786   :  { %p639_p7 = scmp.ne.s32.totalorder %s894_s11, %s638_s23  ;;  %p642_p8 = scmp.lt.u32.totalorder %s638_s23, %s894_s11 }
 0x788   :  { %p644_p9 = pnand %p642_p8, %p639_p7 }
 0x78a   :  { %647 = shalt.err (!%p644_p9)
}
 0x78b   :  { %515 = dma.vmem_to_hbm [thread:$0]  %s513_s9, 16, %s894_s11, [#allocation5]  }
 0x78c   :  { %652 = dma.done.wait [#allocation5], 16  }
 0x78d   :  { %653 = vsyncadd [#allocation5], 4294967280 }
 0x78e   :  { %519 = vsyncpa [#allocation4], 1 }
 0x78f   :  { %520 = vsyncpa [#allocation7], 1 }
 0x790   :  { %521 = vsyncpa [#allocation5], 1 }

</bundles_post_ra>
